<compile_context>
chip_gen: v7x
topology: tpu7x:2x2x1
jax: 0.10.0
libtpu: 0.0.40
codegen_flags: <defaults>
</compile_context>

<pallas_src>
import functools

import jax
import jax.numpy as jnp
from jax.experimental import pallas as pl
from jax.experimental.pallas import tpu as pltpu


def _round_up(x, m):
    return (x + m - 1) // m * m


def _vmem_capacity_bytes():
    try:
        return int(pltpu.get_tpu_info().vmem_capacity_bytes)
    except Exception:
        return 64 << 20  # conservative fallback if introspection is unavailable


def _lora_qkv_kernel(x_ref, w_ref, b_ref, a_ref, bcat_ref, o_ref):
    # x_ref    : (tm, C)    token tile (native dtype, cast in-kernel)
    # w_ref    : (C, 3C)    fused qkv weight, (in, out) layout (bf16)
    # b_ref    : (1, 3C)    fused qkv bias (f32)
    # a_ref    : (C, 2r)    [A_q^T | A_v^T] (bf16)
    # bcat_ref : (2r, 3C)   rows 0:r -> B_q^T in cols [0:C], rows r:2r -> B_v^T in
    #                       cols [2C:3C], zeros elsewhere (bf16)
    # o_ref    : (tm, 3C)   output tile (bf16 by default)
    x = x_ref[...].astype(w_ref.dtype)            # in-kernel cast (no host cast pass)

    # Fused LoRA path: one small A matmul, one block-sparse B matmul.
    xa = jnp.dot(x, a_ref[...], preferred_element_type=jnp.float32)
    lora = jnp.dot(xa.astype(bcat_ref.dtype), bcat_ref[...],
                   preferred_element_type=jnp.float32)

    # Single sum feeding the store, with the big qkv matmul as the LAST accumulate so
    # the MXU result path can fold the LoRA/bias terms (v7x MRB in-place accumulate).
    o_ref[...] = (lora + b_ref[...]
                  + jnp.dot(x, w_ref[...], preferred_element_type=jnp.float32)
                  ).astype(o_ref.dtype)


def _vmem_need_bytes(tm, C, r2, x_bytes, w_bytes, out_bytes):
    x_buf = 2 * tm * C * x_bytes                   # double-buffered input tile
    x_cast = tm * C * w_bytes                      # in-kernel bf16 copy of the tile
    o_buf = 2 * tm * 3 * C * out_bytes             # double-buffered output tile
    w = C * 3 * C * w_bytes                        # single-buffered fused weight
    consts = 3 * C * 4 + C * r2 * w_bytes + r2 * 3 * C * w_bytes
    # Simultaneously-live f32 slabs: lora term, qkv matmul result, their sum
    # (conservative), plus the small xa intermediate.
    live = 3 * tm * 3 * C * 4 + tm * r2 * 4
    return x_buf + x_cast + o_buf + w + consts + live


def _vmem_limit_bytes(need, cap):
    return int(min(max(int(need * 1.25) + (2 << 20), 8 << 20), cap))


def prepare_lora_qkv_params(w_qkv, b_qkv, a_q, b_q, a_v, b_v,
                            *, param_dtype=jnp.bfloat16):
    """One-time weight prep (call OUTSIDE the per-step hot loop).

    w_qkv: (3C, C) PyTorch (out, in) layout; b_qkv: (3C,) or None;
    a_q/a_v: (r, C); b_q/b_v: (C, r).
    Returns (w_t, bias, a_cat, b_cat) ready for lora_qkv_apply.
    """
    out_f, C = w_qkv.shape
    assert out_f == 3 * C, (out_f, C)
    r = a_q.shape[0]

    w_t = jnp.asarray(w_qkv, param_dtype).T                      # (C, 3C)
    if b_qkv is None:
        bias = jnp.zeros((1, 3 * C), jnp.float32)
    else:
        bias = jnp.asarray(b_qkv, jnp.float32).reshape(1, 3 * C)

    # [A_q^T | A_v^T]  -> (C, 2r)
    a_cat = jnp.concatenate(
        [jnp.asarray(a_q, param_dtype).T, jnp.asarray(a_v, param_dtype).T], axis=1)

    # Block-sparse fused "B": places the q update in cols [0:C], v update in [2C:3C].
    b_cat = jnp.zeros((2 * r, 3 * C), param_dtype)
    b_cat = b_cat.at[:r, :C].set(jnp.asarray(b_q, param_dtype).T)
    b_cat = b_cat.at[r:, 2 * C:].set(jnp.asarray(b_v, param_dtype).T)
    return w_t, bias, a_cat, b_cat


def _pick_tm(tm, M, C, r2, x_bytes, w_bytes, out_bytes, vmem_cap):
    if tm is None:
        if vmem_cap >= (100 << 20):          # v5e / v6e class (128 MiB physical VMEM)
            tm = 1024 if out_bytes <= 2 else 512
        else:                                # v7x class (64 MiB physical VMEM)
            tm = 512 if out_bytes <= 2 else 256
    tm = max(8, min(tm, _round_up(M, 8)))
    # Shrink tm if the explicit VMEM estimate would exceed the generation-aware cap.
    while tm > 256:
        need = _vmem_need_bytes(tm, C, r2, x_bytes, w_bytes, out_bytes)
        if int(need * 1.25) + (2 << 20) <= vmem_cap:
            break
        tm = max(256, tm // 2)
    return tm


def lora_qkv_apply(x, params, *, tm=None, out_dtype=None):
    """x: (B, H, W, C) token grid. Returns (B, H, W, 3C).

    Output dtype defaults to the param dtype (bf16) — downstream attention consumes
    bf16 anyway and this halves HBM writeback; pass out_dtype=jnp.float32 to opt out.
    """
    w_t, bias, a_cat, b_cat = params
    B, H, W, C = x.shape
    assert w_t.shape == (C, 3 * C), (w_t.shape, C)
    r2 = a_cat.shape[1]                              # 2 * LoRA rank
    M = B * H * W

    out_dtype = jnp.dtype(w_t.dtype) if out_dtype is None else jnp.dtype(out_dtype)
    x_bytes = jnp.dtype(x.dtype).itemsize
    w_bytes = jnp.dtype(w_t.dtype).itemsize
    out_bytes = out_dtype.itemsize

    vmem_cap = _vmem_capacity_bytes() * 3 // 4       # leave compiler headroom
    tm = _pick_tm(tm, M, C, r2, x_bytes, w_bytes, out_bytes, vmem_cap)

    Mp = _round_up(M, tm)
    # On 2-TC chips (small VMEM => v7x class) keep the parallel step count even so
    # megacore sharding doesn't idle one core on the tail step.
    if vmem_cap <= (80 << 20) and Mp // tm > 1 and (Mp // tm) % 2 == 1:
        Mp = _round_up(M, 2 * tm)

    x2 = x.reshape(M, C)                             # no host-side dtype cast
    if Mp != M:
        x2 = jnp.pad(x2, ((0, Mp - M), (0, 0)))

    need = _vmem_need_bytes(tm, C, r2, x_bytes, w_bytes, out_bytes)
    vmem_limit = _vmem_limit_bytes(need, vmem_cap)

    # Constant-index operands: resident once, single-buffered (no double-buffer DMA).
    const = dict(pipeline_mode=pl.Buffered(1))

    grid_spec = pltpu.PrefetchScalarGridSpec(
        num_scalar_prefetch=0,
        grid=(Mp // tm,),
        in_specs=[
            pl.BlockSpec((tm, C), lambda i: (i, 0)),                 # x tile
            pl.BlockSpec((C, 3 * C), lambda i: (0, 0), **const),     # W_qkv^T
            pl.BlockSpec((1, 3 * C), lambda i: (0, 0), **const),     # bias
            pl.BlockSpec((C, r2), lambda i: (0, 0), **const),        # [A_q^T | A_v^T]
            pl.BlockSpec((r2, 3 * C), lambda i: (0, 0), **const),    # fused B
        ],
        out_specs=pl.BlockSpec((tm, 3 * C), lambda i: (i, 0)),
    )

    flops = 2 * Mp * 3 * C * C + 2 * Mp * r2 * C + 2 * Mp * r2 * 3 * C
    bytes_accessed = (Mp * C * x_bytes + C * 3 * C * w_bytes + 3 * C * 4
                      + C * r2 * w_bytes + r2 * 3 * C * w_bytes
                      + Mp * 3 * C * out_bytes)

    out = pl.pallas_call(
        _lora_qkv_kernel,
        out_shape=jax.ShapeDtypeStruct((Mp, 3 * C), out_dtype),
        grid_spec=grid_spec,
        compiler_params=pltpu.CompilerParams(
            dimension_semantics=("parallel",),
            vmem_limit_bytes=vmem_limit,
        ),
        cost_estimate=pl.CostEstimate(flops=flops, transcendentals=0,
                                      bytes_accessed=bytes_accessed),
    )(x2, w_t, bias, a_cat, b_cat)

    if Mp != M:
        out = out[:M]
    return out.reshape(B, H, W, 3 * C)


def lora_qkv(x, w_qkv, b_qkv, a_q, b_q, a_v, b_v, *, tm=None,
             param_dtype=jnp.bfloat16, out_dtype=None):
    """Convenience wrapper: prepares params then applies (prep should normally be hoisted)."""
    params = prepare_lora_qkv_params(w_qkv, b_qkv, a_q, b_q, a_v, b_v,
                                     param_dtype=param_dtype)
    return lora_qkv_apply(x, params, tm=tm, out_dtype=out_dtype)


if __name__ == "__main__":
    # Small shapes consistent with the module: (B, H, W, C) token grid, LoRA rank r.
    B, H, W, C, r = 2, 8, 8, 32, 4

    key = jax.random.PRNGKey(0)
    kx, kw, kb, kaq, kbq, kav, kbv = jax.random.split(key, 7)

    x = jax.random.normal(kx, (B, H, W, C), dtype=jnp.float32)
    w_qkv = jax.random.normal(kw, (3 * C, C), dtype=jnp.float32) * 0.02
    b_qkv = jax.random.normal(kb, (3 * C,), dtype=jnp.float32) * 0.01
    a_q = jax.random.normal(kaq, (r, C), dtype=jnp.float32) * 0.1
    b_q = jax.random.normal(kbq, (C, r), dtype=jnp.float32) * 0.1
    a_v = jax.random.normal(kav, (r, C), dtype=jnp.float32) * 0.1
    b_v = jax.random.normal(kbv, (C, r), dtype=jnp.float32) * 0.1

    params = prepare_lora_qkv_params(w_qkv, b_qkv, a_q, b_q, a_v, b_v)
    out = lora_qkv_apply(x, params)
    out = jax.block_until_ready(out)

    # Pure-JAX reference computed from the same bf16-quantized operands (f32
    # accumulation), mirroring the module's math: qkv + LoRA-q into [:C],
    # LoRA-v into [2C:].
    cd = jnp.bfloat16
    x2 = x.reshape(-1, C).astype(cd)
    ref = (jnp.dot(x2, w_qkv.astype(cd).T, preferred_element_type=jnp.float32)
           + b_qkv.astype(jnp.float32))
    xa_q = jnp.dot(x2, a_q.astype(cd).T, preferred_element_type=jnp.float32).astype(cd)
    xa_v = jnp.dot(x2, a_v.astype(cd).T, preferred_element_type=jnp.float32).astype(cd)
    new_q = jnp.dot(xa_q, b_q.astype(cd).T, preferred_element_type=jnp.float32)
    new_v = jnp.dot(xa_v, b_v.astype(cd).T, preferred_element_type=jnp.float32)
    ref = ref.at[:, :C].add(new_q).at[:, 2 * C:].add(new_v)
    ref = ref.reshape(B, H, W, 3 * C).astype(jnp.float32)

    assert out.shape == (B, H, W, 3 * C), out.shape
    assert out.dtype == jnp.bfloat16, out.dtype
    assert jnp.allclose(out.astype(jnp.float32), ref, atol=2e-2, rtol=2e-2), \
        "mismatch vs reference"
    print("KERNEL_OK")
</pallas_src>

<mosaic_0001>
module attributes {stable_mosaic.version = 11 : i64} {
  func.func @_lora_qkv_kernel(%arg0: i32, %arg1: memref<128x32xf32, #tpu.memory_space<vmem>>, %arg2: memref<32x96xbf16, #tpu.memory_space<vmem>>, %arg3: memref<1x96xf32, #tpu.memory_space<vmem>>, %arg4: memref<32x8xbf16, #tpu.memory_space<vmem>>, %arg5: memref<8x96xbf16, #tpu.memory_space<vmem>>, %arg6: memref<128x96xbf16, #tpu.memory_space<vmem>>) attributes {dimension_semantics = [#tpu.dimension_semantics<parallel>], iteration_bounds = array<i64: 1>, scalar_prefetch = 0 : i64, scratch_operands = 0 : i64, tpu.core_type = #tpu.core_type<tc>, window_params = [{transform_indices = @transform_0, window_bounds = array<i64: 128, 32>}, {pipeline_mode = #tpu.pipeline_mode<synchronous>, transform_indices = @transform_1, window_bounds = array<i64: 32, 96>}, {pipeline_mode = #tpu.pipeline_mode<synchronous>, transform_indices = @transform_2, window_bounds = array<i64: 1, 96>}, {pipeline_mode = #tpu.pipeline_mode<synchronous>, transform_indices = @transform_3, window_bounds = array<i64: 32, 8>}, {pipeline_mode = #tpu.pipeline_mode<synchronous>, transform_indices = @transform_4, window_bounds = array<i64: 8, 96>}, {transform_indices = @transform_5, window_bounds = array<i64: 128, 96>}]} {
    %c0 = arith.constant 0 : index
    %c0_0 = arith.constant 0 : index
    %0 = vector.load %arg1[%c0, %c0_0] : memref<128x32xf32, #tpu.memory_space<vmem>>, vector<128x32xf32>
    %1 = arith.truncf %0 : vector<128x32xf32> to vector<128x32xbf16>
    %c0_1 = arith.constant 0 : index
    %c0_2 = arith.constant 0 : index
    %2 = vector.load %arg4[%c0_1, %c0_2] : memref<32x8xbf16, #tpu.memory_space<vmem>>, vector<32x8xbf16>
    %cst = arith.constant dense<0.000000e+00> : vector<128x8xf32>
    %3 = tpu.matmul %1, %2, %cst {dimension_numbers = #tpu.dot_dimension_numbers<[1], [0], [0], [1], [0, 0, 1, 1], [], []>} : vector<128x32xbf16>, vector<32x8xbf16>, vector<128x8xf32> -> vector<128x8xf32>
    %4 = arith.truncf %3 : vector<128x8xf32> to vector<128x8xbf16>
    %c0_3 = arith.constant 0 : index
    %c0_4 = arith.constant 0 : index
    %5 = vector.load %arg5[%c0_3, %c0_4] : memref<8x96xbf16, #tpu.memory_space<vmem>>, vector<8x96xbf16>
    %cst_5 = arith.constant dense<0.000000e+00> : vector<128x96xf32>
    %6 = tpu.matmul %4, %5, %cst_5 {dimension_numbers = #tpu.dot_dimension_numbers<[1], [0], [0], [1], [0, 0, 1, 1], [], []>} : vector<128x8xbf16>, vector<8x96xbf16>, vector<128x96xf32> -> vector<128x96xf32>
    %c0_6 = arith.constant 0 : index
    %c0_7 = arith.constant 0 : index
    %7 = vector.load %arg3[%c0_6, %c0_7] : memref<1x96xf32, #tpu.memory_space<vmem>>, vector<1x96xf32>
    %8 = vector.broadcast %7 : vector<1x96xf32> to vector<128x96xf32>
    %9 = arith.addf %6, %8 : vector<128x96xf32>
    %c0_8 = arith.constant 0 : index
    %c0_9 = arith.constant 0 : index
    %10 = vector.load %arg2[%c0_8, %c0_9] : memref<32x96xbf16, #tpu.memory_space<vmem>>, vector<32x96xbf16>
    %cst_10 = arith.constant dense<0.000000e+00> : vector<128x96xf32>
    %11 = tpu.matmul %1, %10, %cst_10 {dimension_numbers = #tpu.dot_dimension_numbers<[1], [0], [0], [1], [0, 0, 1, 1], [], []>} : vector<128x32xbf16>, vector<32x96xbf16>, vector<128x96xf32> -> vector<128x96xf32>
    %12 = arith.addf %9, %11 : vector<128x96xf32>
    %13 = arith.truncf %12 : vector<128x96xf32> to vector<128x96xbf16>
    %c0_11 = arith.constant 0 : index
    %c0_12 = arith.constant 0 : index
    %14 = vector.load %arg6[%c0_11, %c0_12] : memref<128x96xbf16, #tpu.memory_space<vmem>>, vector<128x96xbf16>
    tpu.vector_store %arg6[%c0_11, %c0_12], %13 {strides = array<i32>} : memref<128x96xbf16, #tpu.memory_space<vmem>>, vector<128x96xbf16>,
    return
  }
  func.func @transform_0(%arg0: i32) -> (i32, i32) {
    %c0_i32 = arith.constant 0 : i32
    %c0_i32_0 = arith.constant 0 : i32
    return %arg0, %c0_i32 : i32, i32
  }
  func.func @transform_1(%arg0: i32) -> (i32, i32) {
    %c0_i32 = arith.constant 0 : i32
    %c0_i32_0 = arith.constant 0 : i32
    %c0_i32_1 = arith.constant 0 : i32
    return %c0_i32, %c0_i32_0 : i32, i32
  }
  func.func @transform_2(%arg0: i32) -> (i32, i32) {
    %c0_i32 = arith.constant 0 : i32
    %c0_i32_0 = arith.constant 0 : i32
    %c0_i32_1 = arith.constant 0 : i32
    return %c0_i32, %c0_i32_0 : i32, i32
  }
  func.func @transform_3(%arg0: i32) -> (i32, i32) {
    %c0_i32 = arith.constant 0 : i32
    %c0_i32_0 = arith.constant 0 : i32
    %c0_i32_1 = arith.constant 0 : i32
    return %c0_i32, %c0_i32_0 : i32, i32
  }
  func.func @transform_4(%arg0: i32) -> (i32, i32) {
    %c0_i32 = arith.constant 0 : i32
    %c0_i32_0 = arith.constant 0 : i32
    %c0_i32_1 = arith.constant 0 : i32
    return %c0_i32, %c0_i32_0 : i32, i32
  }
  func.func @transform_5(%arg0: i32) -> (i32, i32) {
    %c0_i32 = arith.constant 0 : i32
    %c0_i32_0 = arith.constant 0 : i32
    return %arg0, %c0_i32 : i32, i32
  }
}

</mosaic_0001>

<bundles_post_ra>
// kernel: tpu_custom_call.1
= control target key start
LH: loop header
LB: loop body
LE: loop exit
PB: predicated region body
PF: predicated region fallthrough
CT: control target
= control target key end

     0   :  { %vm61_vm0 = vcmask 261120   ;;  %vm224_vm1 = vcmask 1043456   ;;  %vm199_vm2 = vcmask 64512   ;;  %vm518_vm3 = vcmask 781312   ;;  %s949_s3 = inlined_call_operand.vmem [shape: bf16[32,8], index: 3, kind: input, shape index: {}]   ;;  %s950_s0 = inlined_call_operand.vmem [shape: f32[128,32], index: 0, kind: input, shape index: {}]   ;;  %s951_s4 = inlined_call_operand.vmem [shape: bf16[8,96], index: 4, kind: input, shape index: {}]   ;;  %s952_s1 = inlined_call_operand.vmem [shape: bf16[32,96], index: 1, kind: input, shape index: {}]   ;;  %s953_s2 = inlined_call_operand.vmem [shape: f32[1,96], index: 2, kind: input, shape index: {}]   ;;  %s954_s5 = inlined_call_operand.vmem [shape: bf16[128,96], index: 5, kind: output, shape index: {}]  }
   0x1   :  { %v723_v0 = vld [vmem:[%s949_s3] sm:$0xff]   ;;  %v724_v1 = vld [vmem:[%s949_s3 + $0x8] sm:$0xff]   ;;  %v23_v5 = vld [vmem:[%s950_s0 + $0x10] sm:$0xff] }
   0x2   :  { %629 = vmatprep.subr.bf16.mxu0 %v723_v0  ;;  %v21_v2 = vld [vmem:[%s950_s0] sm:$0xff]  ;;  %v22_v3 = vld [vmem:[%s950_s0 + $0x8] sm:$0xff]  ;;  %v24_v6 = vld [vmem:[%s950_s0 + $0x18] sm:$0xff] }
   0x3   :  { %630 = vmatpush3.bf16.msra.mxu0 %v723_v0  ;;  %v769_v4 = vpack.c.bf16 %v22_v3, %v21_v2  ;;  %v25_v7 = vld [vmem:[%s950_s0 + $0x20] sm:$0xff]  ;;  %v26_v8 = vld [vmem:[%s950_s0 + $0x28] sm:$0xff]  ;;  %v785_v9 = vpack.c.bf16 %v24_v6, %v23_v5  ;;  %v27_v11 = vld [vmem:[%s950_s0 + $0x30] sm:$0xff] }
   0x4   :  { %631 = vmatprep.subr.bf16.mxu0 %v724_v1  ;;  %v787_v10 = vpack.c.bf16 %v26_v8, %v25_v7  ;;  %v28_v12 = vld [vmem:[%s950_s0 + $0x38] sm:$0xff]  ;;  %v29_v13 = vld [vmem:[%s950_s0 + $0x40] sm:$0xff]  ;;  %v30_v14 = vld [vmem:[%s950_s0 + $0x48] sm:$0xff] }
   0x5   :  { %633 = vmatprep.mubr.msk.bf16.mxu0 %vm61_vm0, %v769_v4  ;;  %v805_v15 = vpack.c.bf16 %v28_v12, %v27_v11  ;;  %v807_v16 = vpack.c.bf16 %v30_v14, %v29_v13  ;;  %v31_v17 = vld [vmem:[%s950_s0 + $0x50] sm:$0xff]  ;;  %v32_v18 = vld [vmem:[%s950_s0 + $0x58] sm:$0xff]  ;;  %v33_v19 = vld [vmem:[%s950_s0 + $0x60] sm:$0xff] }
   0x6   :  { %v34_v20 = vld [vmem:[%s950_s0 + $0x68] sm:$0xff]  ;;  %v42_v21 = vpack.c.bf16 %v32_v18, %v31_v17  ;;  %v35_v23 = vld [vmem:[%s950_s0 + $0x70] sm:$0xff]  ;;  %v36_v24 = vld [vmem:[%s950_s0 + $0x78] sm:$0xff] }
   0x7   :  { %632 = vmatpush3.bf16.msra.mxu0 %v724_v1  ;;  %v43_v22 = vpack.c.bf16 %v34_v20, %v33_v19  ;;  %v44_v25 = vpack.c.bf16 %v36_v24, %v35_v23  ;;  %v191_v26 = vld [vmem:[%s951_s4] sm:$0xf]  ;;  %v726_v41 = vld [vmem:[%s952_s1 + $0x8] sm:$0xff]  }
   0x8   :  { %721 = vmatprep.subr.msk.bf16.mxu0 %vm224_vm1, %v191_v26  ;;  %v226_v27 = vsel %vm224_vm1, %v191_v26, 0  ;;  %722 = vmatprep.subr.msk.bf16.mxu1 %vm224_vm1, %v191_v26  ;;  %v725_v28 = vld [vmem:[%s952_s1] sm:$0xff]  }
   0x9   :  { %688 = vmatpush3.bf16.msra.mxu1 %v226_v27  ;;  %v867_v58 = vld [vmem:[%s953_s2] ss:$0 sm:$0xff] }
   0xa   :  { %634 = vmatmul.mubr.msk.bf16.vlgmr.msra.gmra.mrb[0].mxu0 %vm61_vm0, %v785_v9  ;;  %667 = vmatprep.subr.bf16.mxu1 %v725_v28 }
   0xb   :  { %637 = vmatprep.mubr.msk.bf16.mxu0 %vm61_vm0, %v787_v10  ;;  %650 = vmatpush3.bf16.msra.mxu0 %v226_v27 }
  0x12   :  { %638 = vmatmul.mubr.msk.bf16.gmra.mrb[4].mxu0 %vm61_vm0, %v805_v15 }
  0x13   :  { %641 = vmatprep.mubr.msk.bf16.mxu0 %vm61_vm0, %v807_v16 }
  0x1a   :  { %642 = vmatmul.mubr.msk.bf16.gmra.mrb[8].mxu0 %vm61_vm0, %v42_v21 }
  0x1b   :  { %645 = vmatprep.mubr.msk.bf16.mxu0 %vm61_vm0, %v43_v22 }
  0x22   :  { %646 = vmatmul.mubr.msk.bf16.gmra.mrb[12].mxu0 %vm61_vm0, %v44_v25 }
  0xdd   :  { %v635_v29 = vpop.f32.mrb[0].mxu0 }
  0xde   :  { %v120_v30 = vpop.f32.mrb[1].mxu0 }
  0xdf   :  { %v636_v31 = vpop.f32.mrb[2].mxu0 }
  0xe0   :  { %v184_v32 = vpack.c.bf16 %v636_v31, %v635_v29  ;;  %v123_v33 = vpop.f32.mrb[3].mxu0 }
  0xe1   :  { %v183_v34 = vpack.c.bf16 %v123_v33, %v120_v30 }
  0xe3   :  { %651 = vmatprep.mubr.msk.bf16.mxu0 %vm199_vm2, %v183_v34 }
  0xe4   :  { %652 = vmatmul.mubr.msk.bf16.vlgmr.msra.gmra.mrb[16].mxu0 %vm199_vm2, %v184_v32 }
  0xe5   :  { %v639_v35 = vpop.f32.mrb[4].mxu0 }
  0xe6   :  { %v136_v36 = vpop.f32.mrb[5].mxu0 }
  0xe7   :  { %v640_v37 = vpop.f32.mrb[6].mxu0 }
  0xe8   :  { %v186_v38 = vpack.c.bf16 %v640_v37, %v639_v35  ;;  %v139_v39 = vpop.f32.mrb[7].mxu0 }
  0xe9   :  { %v185_v40 = vpack.c.bf16 %v139_v39, %v136_v36 }
  0xeb   :  { %655 = vmatprep.mubr.msk.bf16.mxu1 %vm199_vm2, %v185_v40 }
  0xec   :  { %656 = vmatmul.mubr.msk.bf16.vlgmr.msra.gmra.mrb[0].mxu1 %vm199_vm2, %v186_v38 }
  0xed   :  { %668 = vmatpush3.bf16.msra.mxu1 %v725_v28  ;;  %v643_v42 = vpop.f32.mrb[8].mxu0 }
  0xee   :  { %v152_v43 = vpop.f32.mrb[9].mxu0  ;;  %669 = vmatprep.subr.bf16.mxu1 %v726_v41 }
  0xef   :  { %v644_v44 = vpop.f32.mrb[10].mxu0 }
  0xf0   :  { %v188_v45 = vpack.c.bf16 %v644_v44, %v643_v42  ;;  %v155_v46 = vpop.f32.mrb[11].mxu0 }
  0xf1   :  { %v187_v47 = vpack.c.bf16 %v155_v46, %v152_v43  ;;  %670 = vmatpush3.bf16.msra.mxu1 %v726_v41 }
  0xf3   :  { %659 = vmatprep.mubr.msk.bf16.mxu1 %vm199_vm2, %v187_v47 }
  0xf4   :  { %660 = vmatmul.mubr.msk.bf16.gmra.mrb[4].mxu1 %vm199_vm2, %v188_v45 }
  0xf5   :  { %v647_v48 = vpop.f32.mrb[12].mxu0 }
  0xf6   :  { %v168_v49 = vpop.f32.mrb[13].mxu0 }
  0xf7   :  { %v648_v50 = vpop.f32.mrb[14].mxu0 }
  0xf8   :  { %v190_v51 = vpack.c.bf16 %v648_v50, %v647_v48  ;;  %v171_v52 = vpop.f32.mrb[15].mxu0 }
  0xf9   :  { %v189_v53 = vpack.c.bf16 %v171_v52, %v168_v49 }
  0xfb   :  { %663 = vmatprep.mubr.msk.bf16.mxu1 %vm199_vm2, %v189_v53 }
  0xfc   :  { %664 = vmatmul.mubr.msk.bf16.gmra.mrb[8].mxu1 %vm199_vm2, %v190_v51 }
  0xfd   :  { %671 = vmatprep.mubr.msk.bf16.mxu1 %vm61_vm0, %v769_v4 }
 0x104   :  { %672 = vmatmul.mubr.msk.bf16.vlgmr.msra.gmra.mrb[12].mxu1 %vm61_vm0, %v785_v9 }
 0x105   :  { %675 = vmatprep.mubr.msk.bf16.mxu1 %vm61_vm0, %v787_v10 }
 0x10c   :  { %676 = vmatmul.mubr.msk.bf16.gmra.mrb[0].mxu1 %vm61_vm0, %v805_v15 }
 0x10d   :  { %679 = vmatprep.mubr.msk.bf16.mxu1 %vm61_vm0, %v807_v16 }
 0x114   :  { %680 = vmatmul.mubr.msk.bf16.gmra.mrb[4].mxu1 %vm61_vm0, %v42_v21 }
 0x115   :  { %683 = vmatprep.mubr.msk.bf16.mxu1 %vm61_vm0, %v43_v22 }
 0x11c   :  { %684 = vmatmul.mubr.msk.bf16.gmra.mrb[8].mxu1 %vm61_vm0, %v44_v25 }
 0x1b7   :  { %v653_v54 = vpop.f32.mrb[16].mxu0 }
 0x1b8   :  { %v262_v55 = vpop.f32.mrb[17].mxu0  ;;  %v271_v59 = vadd.f32 %v653_v54, %v867_v58 }
 0x1b9   :  { %v654_v56 = vpop.f32.mrb[18].mxu0  ;;  %v263_v60 = vadd.f32 %v867_v58, %v262_v55 }
 0x1ba   :  { %v265_v57 = vpop.f32.mrb[19].mxu0  ;;  %v274_v62 = vadd.f32 %v654_v56, %v867_v58 }
 0x1bb   :  { %v266_v1 = vadd.f32 %v867_v58, %v265_v57 }
 0x1d7   :  { %v673_v61 = vpop.f32.mrb[12].mxu1 }
 0x1d8   :  { %v440_v63 = vadd.f32 %v673_v61, %v271_v59  ;;  %v375_v0 = vpop.f32.mrb[13].mxu1 }
 0x1d9   :  { %v438_v2 = vadd.f32 %v375_v0, %v263_v60  ;;  %v674_v3 = vpop.f32.mrb[14].mxu1 }
 0x1da   :  { %v586_v4 = vpack.c.bf16 %v440_v63, %v440_v63  ;;  %v441_v5 = vadd.f32 %v674_v3, %v274_v62  ;;  %v378_v6 = vpop.f32.mrb[15].mxu1 }
 0x1db   :  { %v584_v7 = vpack.c.bf16 %v438_v2, %v438_v2  ;;  %v439_v8 = vadd.f32 %v378_v6, %v266_v1 }
 0x1dc   :  { %521 = vst.msk [vmem:[%s954_s5 + $0x8] sm:$0xf] %vm518_vm3, %v586_v4  ;;  %v587_v9 = vpack.c.bf16 %v441_v5, %v441_v5 }
 0x1dd   :  { %519 = vst.msk [vmem:[%s954_s5] sm:$0xf] %vm518_vm3, %v584_v7  ;;  %v585_v10 = vpack.c.bf16 %v439_v8, %v439_v8 }
 0x1de   :  { %522 = vst.msk [vmem:[%s954_s5 + $0xc] sm:$0xf] %vm518_vm3, %v587_v9 }
 0x1df   :  { %520 = vst.msk [vmem:[%s954_s5 + $0x4] sm:$0xf] %vm518_vm3, %v585_v10  ;;  %v677_v11 = vpop.f32.mrb[0].mxu1 }
 0x1e0   :  { %v697_v12 = vadd.f32 %v677_v11, %v867_v58  ;;  %v391_v13 = vpop.f32.mrb[1].mxu1 }
 0x1e1   :  { %v698_v14 = vadd.f32 %v867_v58, %v391_v13  ;;  %v678_v15 = vpop.f32.mrb[2].mxu1 }
 0x1e2   :  { %v590_v16 = vpack.c.bf16 %v697_v12, %v697_v12  ;;  %v699_v17 = vadd.f32 %v678_v15, %v867_v58  ;;  %v394_v18 = vpop.f32.mrb[3].mxu1 }
 0x1e3   :  { %v588_v19 = vpack.c.bf16 %v698_v14, %v698_v14  ;;  %v700_v20 = vadd.f32 %v867_v58, %v394_v18 }
 0x1e4   :  { %525 = vst.msk [vmem:[%s954_s5 + $0x18] sm:$0xf] %vm518_vm3, %v590_v16  ;;  %v591_v21 = vpack.c.bf16 %v699_v17, %v699_v17 }
 0x1e5   :  { %523 = vst.msk [vmem:[%s954_s5 + $0x10] sm:$0xf] %vm518_vm3, %v588_v19  ;;  %v589_v22 = vpack.c.bf16 %v700_v20, %v700_v20 }
 0x1e6   :  { %526 = vst.msk [vmem:[%s954_s5 + $0x1c] sm:$0xf] %vm518_vm3, %v591_v21 }
 0x1e7   :  { %524 = vst.msk [vmem:[%s954_s5 + $0x14] sm:$0xf] %vm518_vm3, %v589_v22  ;;  %v681_v23 = vpop.f32.mrb[4].mxu1 }
 0x1e8   :  { %v701_v24 = vadd.f32 %v681_v23, %v867_v58  ;;  %v407_v25 = vpop.f32.mrb[5].mxu1 }
 0x1e9   :  { %v702_v26 = vadd.f32 %v867_v58, %v407_v25  ;;  %v682_v27 = vpop.f32.mrb[6].mxu1 }
 0x1ea   :  { %v594_v28 = vpack.c.bf16 %v701_v24, %v701_v24  ;;  %v703_v29 = vadd.f32 %v682_v27, %v867_v58  ;;  %v410_v30 = vpop.f32.mrb[7].mxu1 }
 0x1eb   :  { %v592_v31 = vpack.c.bf16 %v702_v26, %v702_v26  ;;  %v704_v32 = vadd.f32 %v867_v58, %v410_v30 }
 0x1ec   :  { %529 = vst.msk [vmem:[%s954_s5 + $0x28] sm:$0xf] %vm518_vm3, %v594_v28  ;;  %v595_v33 = vpack.c.bf16 %v703_v29, %v703_v29 }
 0x1ed   :  { %527 = vst.msk [vmem:[%s954_s5 + $0x20] sm:$0xf] %vm518_vm3, %v592_v31  ;;  %v593_v34 = vpack.c.bf16 %v704_v32, %v704_v32 }
 0x1ee   :  { %530 = vst.msk [vmem:[%s954_s5 + $0x2c] sm:$0xf] %vm518_vm3, %v595_v33 }
 0x1ef   :  { %528 = vst.msk [vmem:[%s954_s5 + $0x24] sm:$0xf] %vm518_vm3, %v593_v34  ;;  %v685_v35 = vpop.f32.mrb[8].mxu1 }
 0x1f0   :  { %v705_v36 = vadd.f32 %v685_v35, %v867_v58  ;;  %v423_v37 = vpop.f32.mrb[9].mxu1 }
 0x1f1   :  { %v706_v38 = vadd.f32 %v867_v58, %v423_v37  ;;  %v686_v39 = vpop.f32.mrb[10].mxu1 }
 0x1f2   :  { %v598_v40 = vpack.c.bf16 %v705_v36, %v705_v36  ;;  %v707_v41 = vadd.f32 %v686_v39, %v867_v58  ;;  %v426_v42 = vpop.f32.mrb[11].mxu1 }
 0x1f3   :  { %v596_v43 = vpack.c.bf16 %v706_v38, %v706_v38  ;;  %v708_v44 = vadd.f32 %v867_v58, %v426_v42 }
 0x1f4   :  { %533 = vst.msk [vmem:[%s954_s5 + $0x38] sm:$0xf] %vm518_vm3, %v598_v40  ;;  %v599_v45 = vpack.c.bf16 %v707_v41, %v707_v41 }
 0x1f5   :  { %531 = vst.msk [vmem:[%s954_s5 + $0x30] sm:$0xf] %vm518_vm3, %v596_v43  ;;  %v597_v46 = vpack.c.bf16 %v708_v44, %v708_v44 }
 0x1f6   :  { %534 = vst.msk [vmem:[%s954_s5 + $0x3c] sm:$0xf] %vm518_vm3, %v599_v45 }
 0x1f7   :  { %532 = vst.msk [vmem:[%s954_s5 + $0x34] sm:$0xf] %vm518_vm3, %v597_v46 }

</bundles_post_ra>
